<compile_context>
chip_gen: v7x
topology: tpu7x:2x2x1
jax: 0.10.0
libtpu: 0.0.40
codegen_flags: <defaults>
</compile_context>

<pallas_src>
import functools
import math

import jax
import jax.numpy as jnp
from jax import lax
from jax.experimental import pallas as pl
from jax.experimental.pallas import tpu as pltpu


def _gelu_tanh(x, poly_dtype=jnp.float32):
    """GELU with tanh approximation (matches torch.nn.GELU(approximate='tanh')).

    The tanh itself always runs in f32 (EUP); the surrounding polynomial runs
    in `poly_dtype` (bf16 on v6e/v7x for 2x VALU throughput, f32 elsewhere).
    """
    c = math.sqrt(2.0 / math.pi)
    xp = x.astype(poly_dtype)
    inner = (c * (xp + 0.044715 * (xp * xp * xp))).astype(jnp.float32)
    t = jnp.tanh(inner).astype(poly_dtype)
    return (0.5 * xp) * (1.0 + t)


def _round_up(a, b):
    return (a + b - 1) // b * b


def _pick_hidden_chunk(hidden, target):
    """Largest chunk <= target dividing `hidden`, preferring 256-multiples
    (v6e/v7x MXUs are 2x256x256), then 128-multiples; else full hidden."""
    if hidden <= target:
        return hidden
    for step in (256, 128):
        th = (target // step) * step
        while th >= step:
            if hidden % th == 0:
                return th
            th -= step
    return hidden


def _tpu_info():
    """Returns (VMEM capacity in bytes, whether the VPU has a bf16 path)."""
    vmem_cap = 64 << 20  # conservative default = v7x per-TensorCore VMEM
    try:
        info = pltpu.get_tpu_info()
        cap = getattr(info, "vmem_capacity_bytes", None)
        if cap:
            vmem_cap = int(cap)
    except Exception:
        pass
    has_bf16_vpu = False
    try:
        kind = jax.devices()[0].device_kind.lower()
        # v6e / v7x have a bf16 VALU; v2-v5 do not.
        has_bf16_vpu = not any(tag in kind for tag in ("v2", "v3", "v4", "v5"))
    except Exception:
        pass
    return vmem_cap, has_bf16_vpu


# ---------------------------------------------------------------------------
# Kernels
# ---------------------------------------------------------------------------
def _mlp_kernel_resident(x_ref, wfc_ref, bfc_ref, wproj_ref, bproj_ref,
                         o_ref, acc_ref, *, hidden_chunks, th, unroll,
                         gelu_poly_dtype):
    """One row tile; both weights VMEM-resident; hidden dim chunked in-kernel.

    x_ref:     (tm, C)  compute dtype
    wfc_ref:   (C, H)   compute dtype (resident)
    bfc_ref:   (1, H)   f32
    wproj_ref: (H, C)   compute dtype (resident)
    bproj_ref: (1, C)   f32
    o_ref:     (tm, C)  output dtype
    acc_ref:   (tm, C)  f32 accumulator scratch
    """
    x = x_ref[...]

    def chunk(off):
        w1 = wfc_ref[:, pl.ds(off, th)]            # (C, th)
        b1 = bfc_ref[:, pl.ds(off, th)]            # (1, th), f32
        w2 = wproj_ref[pl.ds(off, th), :]          # (th, C)
        h = jnp.dot(x, w1, preferred_element_type=jnp.float32) + b1
        h = _gelu_tanh(h, gelu_poly_dtype)
        return jnp.dot(h.astype(w2.dtype), w2,
                       preferred_element_type=jnp.float32)

    # Fold accumulator init into the first hidden chunk (saves a full memset
    # pass over the (tm, C) f32 scratch per grid step).
    acc_ref[...] = chunk(0)

    if hidden_chunks > 1:
        def body(c, carry):
            acc_ref[...] += chunk(pl.multiple_of(c * th, th))
            return carry
        lax.fori_loop(1, hidden_chunks, body, 0, unroll=unroll)

    o_ref[...] = (acc_ref[...] + bproj_ref[...]).astype(o_ref.dtype)


def _mlp_kernel_streamed(x_ref, wfc_ref, bfc_ref, wproj_ref, bproj_ref,
                         o_ref, acc_ref, *, gelu_poly_dtype):
    """Weight-streaming mode: hidden chunk index is the (arbitrary) grid axis 1.

    x_ref:     (tm, C)   wfc_ref: (C, th)   bfc_ref: (1, th)
    wproj_ref: (th, C)   bproj_ref: (1, C)  o_ref: (tm, C)   acc_ref: (tm, C) f32
    """
    k = pl.program_id(1)
    h = jnp.dot(x_ref[...], wfc_ref[...],
                preferred_element_type=jnp.float32) + bfc_ref[...]
    h = _gelu_tanh(h, gelu_poly_dtype)
    contrib = jnp.dot(h.astype(wproj_ref.dtype), wproj_ref[...],
                      preferred_element_type=jnp.float32)

    @pl.when(k == 0)
    def _():
        acc_ref[...] = contrib

    @pl.when(k > 0)
    def _():
        acc_ref[...] += contrib

    @pl.when(k == pl.num_programs(1) - 1)
    def _():
        o_ref[...] = (acc_ref[...] + bproj_ref[...]).astype(o_ref.dtype)


# ---------------------------------------------------------------------------
# Wrapper
# ---------------------------------------------------------------------------
def mlp_forward(x, w_fc, b_fc, w_proj, b_proj, *, tm=512, hidden_chunk=512,
                compute_dtype=jnp.bfloat16, force_stream=None):
    """x: [B, T, C]; w_fc: [C, 4C]; b_fc: [4C]; w_proj: [4C, C]; b_proj: [C].

    compute_dtype: MXU operand dtype (default bf16; pass jnp.float32 for the
    strict-precision path).  Accumulation and tanh are always f32; output keeps
    x.dtype.  force_stream=True/False overrides the resident-vs-streamed
    weight-placement decision (None = auto from VMEM capacity).
    For repeated calls, pre-cast the weights to compute_dtype once outside.
    """
    B, T, C = x.shape
    Cin, H = w_fc.shape
    assert Cin == C and w_proj.shape == (H, C)
    assert b_fc.shape == (H,) and b_proj.shape == (C,)

    out_dtype = x.dtype
    compute_dtype = jnp.dtype(compute_dtype)
    cbytes = compute_dtype.itemsize
    obytes = jnp.dtype(out_dtype).itemsize

    vmem_cap, has_bf16_vpu = _tpu_info()
    gelu_poly_dtype = (jnp.bfloat16
                       if (compute_dtype == jnp.bfloat16 and has_bf16_vpu)
                       else jnp.float32)

    M = B * T
    # Row tile: as large as requested, 8-aligned; pad rows so tm need not divide M.
    tm = max(8, min(tm, _round_up(M, 8)))
    tm = _round_up(tm, 8)
    # If the row grid would have a single step, halve tm so v7x's second
    # TensorCore is not idle (the axis is marked "parallel").
    if _round_up(M, tm) == tm and tm >= 16:
        tm = _round_up(tm // 2, 8)
    M_pad = _round_up(M, tm)

    th = _pick_hidden_chunk(H, hidden_chunk)
    hidden_chunks = H // th

    # --- data prep (cheap at these sizes; pre-cast weights outside for reuse) ---
    x2d = x.reshape(M, C)
    if M_pad != M:
        # TODO(synk): replace the wrapper-side pad with an in-kernel ragged last
        # tile (masked store) to avoid an extra HBM pass over the activations.
        x2d = jnp.pad(x2d, ((0, M_pad - M), (0, 0)))
    if x2d.dtype != compute_dtype:
        x2d = x2d.astype(compute_dtype)
    w_fc_c = w_fc if w_fc.dtype == compute_dtype else w_fc.astype(compute_dtype)
    w_proj_c = w_proj if w_proj.dtype == compute_dtype else w_proj.astype(compute_dtype)
    b_fc2d = b_fc.reshape(1, H).astype(jnp.float32)
    b_proj2d = b_proj.reshape(1, C).astype(jnp.float32)

    # --- VMEM budget (accurate per-buffer sum, no double hedging) ---
    tile_bytes = 2 * tm * C * cbytes + 2 * tm * C * obytes   # double-buffered x / out
    acc_bytes = tm * C * 4                                   # f32 accumulator scratch
    h_bytes = 2 * tm * th * 4                                # f32 hidden chunk (+ cast slack)
    resident_w_bytes = 2 * C * H * cbytes + (H + C) * 4      # single-buffered weights+biases
    streamed_w_bytes = 2 * (2 * C * th * cbytes + th * 4) + C * 4

    resident_est = tile_bytes + acc_bytes + h_bytes + resident_w_bytes
    streamed_est = tile_bytes + acc_bytes + h_bytes + streamed_w_bytes

    if force_stream is None:
        use_stream = resident_est > 0.8 * vmem_cap
    else:
        use_stream = bool(force_stream)
    vmem_est = streamed_est if use_stream else resident_est
    vmem_limit = int(min(max(int(1.15 * vmem_est) + (2 << 20), 32 << 20),
                         int(0.9 * vmem_cap)))

    def run(single_buffer_weights):
        wmode = pl.Buffered(1) if single_buffer_weights else None

        def wspec(shape, index_map):
            # Constant-index operands are fetched once; single-buffer them.
            if wmode is None:
                return pl.BlockSpec(shape, index_map)
            return pl.BlockSpec(shape, index_map, pipeline_mode=wmode)

        if not use_stream:
            unroll = (hidden_chunks - 1) if hidden_chunks <= 9 else 4
            unroll = max(unroll, 1)
            kernel = functools.partial(
                _mlp_kernel_resident, hidden_chunks=hidden_chunks, th=th,
                unroll=unroll, gelu_poly_dtype=gelu_poly_dtype)
            grid = (M_pad // tm,)
            in_specs = [
                pl.BlockSpec((tm, C), lambda i: (i, 0)),   # x row tile (streamed)
                wspec((C, H), lambda i: (0, 0)),           # c_fc weight (resident)
                wspec((1, H), lambda i: (0, 0)),           # c_fc bias
                wspec((H, C), lambda i: (0, 0)),           # c_proj weight (resident)
                wspec((1, C), lambda i: (0, 0)),           # c_proj bias
            ]
            out_specs = pl.BlockSpec((tm, C), lambda i: (i, 0))
            dims = ("parallel",)
        else:
            kernel = functools.partial(_mlp_kernel_streamed,
                                       gelu_poly_dtype=gelu_poly_dtype)
            grid = (M_pad // tm, hidden_chunks)
            in_specs = [
                pl.BlockSpec((tm, C), lambda i, k: (i, 0)),   # x row tile
                pl.BlockSpec((C, th), lambda i, k: (0, k)),   # c_fc weight block
                pl.BlockSpec((1, th), lambda i, k: (0, k)),   # c_fc bias block
                pl.BlockSpec((th, C), lambda i, k: (k, 0)),   # c_proj weight block
                wspec((1, C), lambda i, k: (0, 0)),           # c_proj bias
            ]
            out_specs = pl.BlockSpec((tm, C), lambda i, k: (i, 0))
            dims = ("parallel", "arbitrary")

        return pl.pallas_call(
            kernel,
            out_shape=jax.ShapeDtypeStruct((M_pad, C), out_dtype),
            grid_spec=pltpu.PrefetchScalarGridSpec(
                num_scalar_prefetch=0,
                grid=grid,
                in_specs=in_specs,
                out_specs=out_specs,
                scratch_shapes=[pltpu.VMEM((tm, C), jnp.float32)],
            ),
            compiler_params=pltpu.CompilerParams(
                dimension_semantics=dims,
                vmem_limit_bytes=vmem_limit,
            ),
        )(x2d, w_fc_c, b_fc2d, w_proj_c, b_proj2d)

    try:
        out2d = run(True)
    except Exception:
        # pl.Buffered(1) not available on this JAX build; fall back to default
        # double-buffering of the constant-index operands (correctness identical).
        out2d = run(False)

    if M_pad != M:
        out2d = out2d[:M]
    return out2d.reshape(B, T, C)


def _reference_mlp(x, w_fc, b_fc, w_proj, b_proj):
    h = jnp.einsum("btc,ch->bth", x, w_fc) + b_fc
    h = _gelu_tanh(h)
    return jnp.einsum("bth,hc->btc", h, w_proj) + b_proj


if __name__ == "__main__":
    key = jax.random.PRNGKey(0)

    def make_params(k, C, H):
        k1, k2, k3, k4 = jax.random.split(k, 4)
        bound_fc = 1.0 / math.sqrt(C)
        bound_proj = 1.0 / math.sqrt(H)
        w_fc = jax.random.uniform(k1, (C, H), jnp.float32, -bound_fc, bound_fc)
        b_fc = jax.random.uniform(k2, (H,), jnp.float32, -bound_fc, bound_fc)
        w_proj = jax.random.uniform(k3, (H, C), jnp.float32, -bound_proj, bound_proj)
        b_proj = jax.random.uniform(k4, (C,), jnp.float32, -bound_proj, bound_proj)
        return w_fc, b_fc, w_proj, b_proj

    # ---- Config A: n_embd=32, hidden=128 (small, consistent with the module) ----
    kx, kp, kx2, kcfg = jax.random.split(key, 4)
    B, T, C = 2, 8, 32
    H = 4 * C
    w_fc, b_fc, w_proj, b_proj = make_params(kp, C, H)

    # 1) f32 path: strict check against the reference (resident weights).
    x = jax.random.normal(kx, (B, T, C), dtype=jnp.float32)
    out = jax.block_until_ready(
        mlp_forward(x, w_fc, b_fc, w_proj, b_proj, compute_dtype=jnp.float32))
    ref = _reference_mlp(x, w_fc, b_fc, w_proj, b_proj)
    assert out.shape == (B, T, C)
    assert jnp.allclose(out, ref, atol=1e-5, rtol=1e-5), "f32 resident mismatch"

    # 2) default bf16 MXU operands with f32 accumulation, odd M (row padding +
    #    row-tile split so the grid has >= 2 steps).
    x_odd = jax.random.normal(kx2, (3, 5, C), dtype=jnp.float32)
    out_bf16 = jax.block_until_ready(
        mlp_forward(x_odd, w_fc, b_fc, w_proj, b_proj))   # compute_dtype defaults to bf16
    ref_odd = _reference_mlp(x_odd, w_fc, b_fc, w_proj, b_proj)
    assert out_bf16.shape == (3, 5, C)
    assert jnp.allclose(out_bf16, ref_odd, atol=3e-2, rtol=3e-2), "bf16 resident mismatch"

    # ---- Config B: n_embd=64, hidden=256 — exercises multi-chunk paths ----
    kcx, kcp = jax.random.split(kcfg)
    B2, T2, C2 = 2, 16, 64
    H2 = 4 * C2
    w_fc2, b_fc2, w_proj2, b_proj2 = make_params(kcp, C2, H2)
    x2 = jax.random.normal(kcx, (B2, T2, C2), dtype=jnp.float32)
    ref2 = _reference_mlp(x2, w_fc2, b_fc2, w_proj2, b_proj2)

    # 3) f32 resident path with 2 hidden chunks (in-kernel fori accumulation).
    out_res = jax.block_until_ready(
        mlp_forward(x2, w_fc2, b_fc2, w_proj2, b_proj2,
                    hidden_chunk=128, compute_dtype=jnp.float32))
    assert jnp.allclose(out_res, ref2, atol=1e-4, rtol=1e-4), "f32 multi-chunk mismatch"

    # 4) bf16 weight-streaming fallback (2nd grid axis, pl.when init/finalize).
    out_stream = jax.block_until_ready(
        mlp_forward(x2, w_fc2, b_fc2, w_proj2, b_proj2,
                    hidden_chunk=128, force_stream=True))
    assert jnp.allclose(out_stream, ref2, atol=3e-2, rtol=3e-2), "bf16 streamed mismatch"

    print("KERNEL_OK")
</pallas_src>

<mosaic_0001>
module attributes {stable_mosaic.version = 11 : i64} {
  func.func @_mlp_kernel_resident(%arg0: i32, %arg1: memref<8x32xf32, #tpu.memory_space<vmem>>, %arg2: memref<32x128xf32, #tpu.memory_space<vmem>>, %arg3: memref<1x128xf32, #tpu.memory_space<vmem>>, %arg4: memref<128x32xf32, #tpu.memory_space<vmem>>, %arg5: memref<1x32xf32, #tpu.memory_space<vmem>>, %arg6: memref<8x32xf32, #tpu.memory_space<vmem>>, %arg7: memref<8x32xf32, #tpu.memory_space<vmem>>) attributes {dimension_semantics = [#tpu.dimension_semantics<parallel>], iteration_bounds = array<i64: 2>, scalar_prefetch = 0 : i64, scratch_operands = 1 : i64, tpu.core_type = #tpu.core_type<tc>, window_params = [{transform_indices = @transform_0, window_bounds = array<i64: 8, 32>}, {pipeline_mode = #tpu.pipeline_mode<synchronous>, transform_indices = @transform_1, window_bounds = array<i64: 32, 128>}, {pipeline_mode = #tpu.pipeline_mode<synchronous>, transform_indices = @transform_2, window_bounds = array<i64: 1, 128>}, {pipeline_mode = #tpu.pipeline_mode<synchronous>, transform_indices = @transform_3, window_bounds = array<i64: 128, 32>}, {pipeline_mode = #tpu.pipeline_mode<synchronous>, transform_indices = @transform_4, window_bounds = array<i64: 1, 32>}, {transform_indices = @transform_5, window_bounds = array<i64: 8, 32>}]} {
    %c0 = arith.constant 0 : index
    %c0_0 = arith.constant 0 : index
    %0 = vector.load %arg1[%c0, %c0_0] : memref<8x32xf32, #tpu.memory_space<vmem>>, vector<8x32xf32>
    %c0_1 = arith.constant 0 : index
    %c0_2 = arith.constant 0 : index
    %1 = vector.load %arg2[%c0_1, %c0_2] : memref<32x128xf32, #tpu.memory_space<vmem>>, vector<32x128xf32>
    %c0_3 = arith.constant 0 : index
    %c0_4 = arith.constant 0 : index
    %2 = vector.load %arg3[%c0_3, %c0_4] : memref<1x128xf32, #tpu.memory_space<vmem>>, vector<1x128xf32>
    %c0_5 = arith.constant 0 : index
    %c0_6 = arith.constant 0 : index
    %3 = vector.load %arg4[%c0_5, %c0_6] : memref<128x32xf32, #tpu.memory_space<vmem>>, vector<128x32xf32>
    %cst = arith.constant dense<0.000000e+00> : vector<8x128xf32>
    %4 = tpu.matmul %0, %1, %cst {dimension_numbers = #tpu.dot_dimension_numbers<[1], [0], [0], [1], [0, 0, 1, 1], [], []>} : vector<8x32xf32>, vector<32x128xf32>, vector<8x128xf32> -> vector<8x128xf32>
    %5 = vector.broadcast %2 : vector<1x128xf32> to vector<8x128xf32>
    %6 = arith.addf %4, %5 : vector<8x128xf32>
    %7 = arith.mulf %6, %6 : vector<8x128xf32>
    %8 = arith.mulf %7, %6 : vector<8x128xf32>
    %cst_7 = arith.constant 4.471500e-02 : f32
    %9 = vector.broadcast %cst_7 : f32 to vector<8x128xf32>
    %10 = arith.mulf %9, %8 : vector<8x128xf32>
    %11 = arith.addf %6, %10 : vector<8x128xf32>
    %cst_8 = arith.constant 0.797884583 : f32
    %12 = vector.broadcast %cst_8 : f32 to vector<8x128xf32>
    %13 = arith.mulf %12, %11 : vector<8x128xf32>
    %14 = math.tanh %13 : vector<8x128xf32>
    %cst_9 = arith.constant 5.000000e-01 : f32
    %15 = vector.broadcast %cst_9 : f32 to vector<8x128xf32>
    %16 = arith.mulf %15, %6 : vector<8x128xf32>
    %cst_10 = arith.constant 1.000000e+00 : f32
    %17 = vector.broadcast %cst_10 : f32 to vector<8x128xf32>
    %18 = arith.addf %17, %14 : vector<8x128xf32>
    %19 = arith.mulf %16, %18 : vector<8x128xf32>
    %cst_11 = arith.constant dense<0.000000e+00> : vector<8x32xf32>
    %20 = tpu.matmul %19, %3, %cst_11 {dimension_numbers = #tpu.dot_dimension_numbers<[1], [0], [0], [1], [0, 0, 1, 1], [], []>} : vector<8x128xf32>, vector<128x32xf32>, vector<8x32xf32> -> vector<8x32xf32>
    %c0_12 = arith.constant 0 : index
    %c0_13 = arith.constant 0 : index
    %21 = vector.load %arg7[%c0_12, %c0_13] : memref<8x32xf32, #tpu.memory_space<vmem>>, vector<8x32xf32>
    tpu.vector_store %arg7[%c0_12, %c0_13], %20 {strides = array<i32>} : memref<8x32xf32, #tpu.memory_space<vmem>>, vector<8x32xf32>,
    %c0_14 = arith.constant 0 : index
    %c0_15 = arith.constant 0 : index
    %22 = vector.load %arg7[%c0_14, %c0_15] : memref<8x32xf32, #tpu.memory_space<vmem>>, vector<8x32xf32>
    %c0_16 = arith.constant 0 : index
    %c0_17 = arith.constant 0 : index
    %23 = vector.load %arg5[%c0_16, %c0_17] : memref<1x32xf32, #tpu.memory_space<vmem>>, vector<1x32xf32>
    %24 = vector.broadcast %23 : vector<1x32xf32> to vector<8x32xf32>
    %25 = arith.addf %22, %24 : vector<8x32xf32>
    %c0_18 = arith.constant 0 : index
    %c0_19 = arith.constant 0 : index
    %26 = vector.load %arg6[%c0_18, %c0_19] : memref<8x32xf32, #tpu.memory_space<vmem>>, vector<8x32xf32>
    tpu.vector_store %arg6[%c0_18, %c0_19], %25 {strides = array<i32>} : memref<8x32xf32, #tpu.memory_space<vmem>>, vector<8x32xf32>,
    return
  }
  func.func @transform_0(%arg0: i32) -> (i32, i32) {
    %c0_i32 = arith.constant 0 : i32
    %c0_i32_0 = arith.constant 0 : i32
    return %arg0, %c0_i32 : i32, i32
  }
  func.func @transform_1(%arg0: i32) -> (i32, i32) {
    %c0_i32 = arith.constant 0 : i32
    %c0_i32_0 = arith.constant 0 : i32
    %c0_i32_1 = arith.constant 0 : i32
    return %c0_i32, %c0_i32_0 : i32, i32
  }
  func.func @transform_2(%arg0: i32) -> (i32, i32) {
    %c0_i32 = arith.constant 0 : i32
    %c0_i32_0 = arith.constant 0 : i32
    %c0_i32_1 = arith.constant 0 : i32
    return %c0_i32, %c0_i32_0 : i32, i32
  }
  func.func @transform_3(%arg0: i32) -> (i32, i32) {
    %c0_i32 = arith.constant 0 : i32
    %c0_i32_0 = arith.constant 0 : i32
    %c0_i32_1 = arith.constant 0 : i32
    return %c0_i32, %c0_i32_0 : i32, i32
  }
  func.func @transform_4(%arg0: i32) -> (i32, i32) {
    %c0_i32 = arith.constant 0 : i32
    %c0_i32_0 = arith.constant 0 : i32
    %c0_i32_1 = arith.constant 0 : i32
    return %c0_i32, %c0_i32_0 : i32, i32
  }
  func.func @transform_5(%arg0: i32) -> (i32, i32) {
    %c0_i32 = arith.constant 0 : i32
    %c0_i32_0 = arith.constant 0 : i32
    return %arg0, %c0_i32 : i32, i32
  }
}

module attributes {stable_mosaic.version = 11 : i64} {
  func.func @_mlp_kernel_resident(%arg0: i32, %arg1: memref<8x32xf32, #tpu.memory_space<vmem>>, %arg2: memref<32x128xf32, #tpu.memory_space<vmem>>, %arg3: memref<1x128xf32, #tpu.memory_space<vmem>>, %arg4: memref<128x32xf32, #tpu.memory_space<vmem>>, %arg5: memref<1x32xf32, #tpu.memory_space<vmem>>, %arg6: memref<8x32xf32, #tpu.memory_space<vmem>>, %arg7: memref<8x32xf32, #tpu.memory_space<vmem>>) attributes {dimension_semantics = [#tpu.dimension_semantics<parallel>], iteration_bounds = array<i64: 2>, scalar_prefetch = 0 : i64, scratch_operands = 1 : i64, tpu.core_type = #tpu.core_type<tc>, window_params = [{transform_indices = @transform_0, window_bounds = array<i64: 8, 32>}, {pipeline_mode = #tpu.pipeline_mode<synchronous>, transform_indices = @transform_1, window_bounds = array<i64: 32, 128>}, {pipeline_mode = #tpu.pipeline_mode<synchronous>, transform_indices = @transform_2, window_bounds = array<i64: 1, 128>}, {pipeline_mode = #tpu.pipeline_mode<synchronous>, transform_indices = @transform_3, window_bounds = array<i64: 128, 32>}, {pipeline_mode = #tpu.pipeline_mode<synchronous>, transform_indices = @transform_4, window_bounds = array<i64: 1, 32>}, {transform_indices = @transform_5, window_bounds = array<i64: 8, 32>}]} {
    %c0 = arith.constant 0 : index
    %c0_0 = arith.constant 0 : index
    %0 = vector.load %arg1[%c0, %c0_0] : memref<8x32xf32, #tpu.memory_space<vmem>>, vector<8x32xf32>
    %c0_1 = arith.constant 0 : index
    %c0_2 = arith.constant 0 : index
    %1 = vector.load %arg2[%c0_1, %c0_2] : memref<32x128xf32, #tpu.memory_space<vmem>>, vector<32x128xf32>
    %c0_3 = arith.constant 0 : index
    %c0_4 = arith.constant 0 : index
    %2 = vector.load %arg3[%c0_3, %c0_4] : memref<1x128xf32, #tpu.memory_space<vmem>>, vector<1x128xf32>
    %c0_5 = arith.constant 0 : index
    %c0_6 = arith.constant 0 : index
    %3 = vector.load %arg4[%c0_5, %c0_6] : memref<128x32xf32, #tpu.memory_space<vmem>>, vector<128x32xf32>
    %cst = arith.constant dense<0.000000e+00> : vector<8x128xf32>
    %4 = tpu.matmul %0, %1, %cst {dimension_numbers = #tpu.dot_dimension_numbers<[1], [0], [0], [1], [0, 0, 1, 1], [], []>} : vector<8x32xf32>, vector<32x128xf32>, vector<8x128xf32> -> vector<8x128xf32>
    %5 = vector.broadcast %2 : vector<1x128xf32> to vector<8x128xf32>
    %6 = arith.addf %4, %5 : vector<8x128xf32>
    %7 = arith.mulf %6, %6 : vector<8x128xf32>
    %8 = arith.mulf %7, %6 : vector<8x128xf32>
    %cst_7 = arith.constant 4.471500e-02 : f32
    %9 = vector.broadcast %cst_7 : f32 to vector<8x128xf32>
    %10 = arith.mulf %9, %8 : vector<8x128xf32>
    %11 = arith.addf %6, %10 : vector<8x128xf32>
    %cst_8 = arith.constant 0.797884583 : f32
    %12 = vector.broadcast %cst_8 : f32 to vector<8x128xf32>
    %13 = arith.mulf %12, %11 : vector<8x128xf32>
    %14 = math.tanh %13 : vector<8x128xf32>
    %cst_9 = arith.constant 5.000000e-01 : f32
    %15 = vector.broadcast %cst_9 : f32 to vector<8x128xf32>
    %16 = arith.mulf %15, %6 : vector<8x128xf32>
    %cst_10 = arith.constant 1.000000e+00 : f32
    %17 = vector.broadcast %cst_10 : f32 to vector<8x128xf32>
    %18 = arith.addf %17, %14 : vector<8x128xf32>
    %19 = arith.mulf %16, %18 : vector<8x128xf32>
    %cst_11 = arith.constant dense<0.000000e+00> : vector<8x32xf32>
    %20 = tpu.matmul %19, %3, %cst_11 {dimension_numbers = #tpu.dot_dimension_numbers<[1], [0], [0], [1], [0, 0, 1, 1], [], []>} : vector<8x128xf32>, vector<128x32xf32>, vector<8x32xf32> -> vector<8x32xf32>
    %c0_12 = arith.constant 0 : index
    %c0_13 = arith.constant 0 : index
    %21 = vector.load %arg7[%c0_12, %c0_13] : memref<8x32xf32, #tpu.memory_space<vmem>>, vector<8x32xf32>
    tpu.vector_store %arg7[%c0_12, %c0_13], %20 {strides = array<i32>} : memref<8x32xf32, #tpu.memory_space<vmem>>, vector<8x32xf32>,
    %c0_14 = arith.constant 0 : index
    %c0_15 = arith.constant 0 : index
    %22 = vector.load %arg7[%c0_14, %c0_15] : memref<8x32xf32, #tpu.memory_space<vmem>>, vector<8x32xf32>
    %c0_16 = arith.constant 0 : index
    %c0_17 = arith.constant 0 : index
    %23 = vector.load %arg5[%c0_16, %c0_17] : memref<1x32xf32, #tpu.memory_space<vmem>>, vector<1x32xf32>
    %24 = vector.broadcast %23 : vector<1x32xf32> to vector<8x32xf32>
    %25 = arith.addf %22, %24 : vector<8x32xf32>
    %c0_18 = arith.constant 0 : index
    %c0_19 = arith.constant 0 : index
    %26 = vector.load %arg6[%c0_18, %c0_19] : memref<8x32xf32, #tpu.memory_space<vmem>>, vector<8x32xf32>
    tpu.vector_store %arg6[%c0_18, %c0_19], %25 {strides = array<i32>} : memref<8x32xf32, #tpu.memory_space<vmem>>, vector<8x32xf32>,
    return
  }
  func.func @transform_0(%arg0: i32) -> (i32, i32) {
    %c0_i32 = arith.constant 0 : i32
    %c0_i32_0 = arith.constant 0 : i32
    return %arg0, %c0_i32 : i32, i32
  }
  func.func @transform_1(%arg0: i32) -> (i32, i32) {
    %c0_i32 = arith.constant 0 : i32
    %c0_i32_0 = arith.constant 0 : i32
    %c0_i32_1 = arith.constant 0 : i32
    return %c0_i32, %c0_i32_0 : i32, i32
  }
  func.func @transform_2(%arg0: i32) -> (i32, i32) {
    %c0_i32 = arith.constant 0 : i32
    %c0_i32_0 = arith.constant 0 : i32
    %c0_i32_1 = arith.constant 0 : i32
    return %c0_i32, %c0_i32_0 : i32, i32
  }
  func.func @transform_3(%arg0: i32) -> (i32, i32) {
    %c0_i32 = arith.constant 0 : i32
    %c0_i32_0 = arith.constant 0 : i32
    %c0_i32_1 = arith.constant 0 : i32
    return %c0_i32, %c0_i32_0 : i32, i32
  }
  func.func @transform_4(%arg0: i32) -> (i32, i32) {
    %c0_i32 = arith.constant 0 : i32
    %c0_i32_0 = arith.constant 0 : i32
    %c0_i32_1 = arith.constant 0 : i32
    return %c0_i32, %c0_i32_0 : i32, i32
  }
  func.func @transform_5(%arg0: i32) -> (i32, i32) {
    %c0_i32 = arith.constant 0 : i32
    %c0_i32_0 = arith.constant 0 : i32
    return %arg0, %c0_i32 : i32, i32
  }
}

</mosaic_0001>

<bundles_post_ra>
// kernel: tpu_custom_call.1
= control target key start
LH: loop header
LB: loop body
LE: loop exit
PB: predicated region body
PF: predicated region fallthrough
CT: control target
= control target key end

     0   :  { %10 = vsyncpa [#allocation4], 0  ;;  %s907_s0 = inlined_call_operand.vmem [shape: f32[16,32], index: 0, kind: input, shape index: {}]   ;;  %s908_s1 = inlined_call_operand.vmem [shape: f32[32,128], index: 1, kind: input, shape index: {}]   ;;  %s909_s2 = inlined_call_operand.vmem [shape: f32[1,128], index: 2, kind: input, shape index: {}]   ;;  %s910_s3 = inlined_call_operand.vmem [shape: f32[128,32], index: 3, kind: input, shape index: {}]   ;;  %s911_s4 = inlined_call_operand.vmem [shape: f32[1,32], index: 4, kind: input, shape index: {}]   ;;  %s912_s5 = inlined_call_operand.hbm [shape: f32[16,32], index: 5, kind: output, shape index: {}]  }
   0x1   :  { %12 = vsyncpa [#allocation4 + $0x1], 0  ;;  %s738_s18 = smov 0   ;;  %s740_s19 = smov 0  }
   0x2   :  { %s742_s20 = smov 0   ;;  %s744_s21 = smov 0  }
   0x3 LB: > { %s759_s22 = sadd.s32 4294967295, %s702_s21   ;;  %s485_s23 = sadd.s32 4294967294, %s702_s21   ;;  %s702_s21 = sphi %s744_s21, %s918_s21   ;;  %s698_s20 = sphi %s742_s20, %s917_s20   ;;  %s694_s19 = sphi %s740_s19, %s916_s19   ;;  %s690_s18 = sphi %s738_s18, %s915_s18  }
   0x4   : > { %s763_s24 = sadd.s32 1, %s702_s21   ;;  %s135_s25 = sadd.s32 1, %s698_s20 }
   0x5   : > { %s132_s26 = ssub.s32 %s702_s21, %s763_s24  ;;  %p145_p0 = scmp.ne.s32.totalorder %s698_s20, %s694_s19 }
   0x6   : > { %p133_p1 = scmp.eq.s32.totalorder %s132_s26, 0  ;;  %p146_p2 = scmp.eq.s32.totalorder %s759_s22, 1 }
   0x7   : > { %p151_p3 = scmp.ne.s32.totalorder %s694_s19, %s690_s18  ;;  %p152_p4 = scmp.eq.s32.totalorder %s485_s23, 1 }
   0x8   : > { %s774_s27 = scalar_select %p133_p1, %s698_s20, %s135_s25  }
   0x9   : > { %p776_p5 = por %p146_p2, %p145_p0  ;;  %p780_p6 = por %p152_p4, %p151_p3 }
   0xa   : > { %p488_p7 = scmp.ge.s32.totalorder %s702_s21, 1  ;;  %p189_p8 = scmp.lt.s32.totalorder %s702_s21, 3 }
   0xc   : > { %p190_p9 = pnand %p488_p7, %p189_p8 }
   0xd   : > { %v221_v0 = vld [vmem:[%s908_s1] sm:$0xff] (!%p190_p9)  ;;  %v222_v1 = vld [vmem:[%s908_s1 + $0x8] sm:$0xff] (!%p190_p9)  ;;  %v223_v2 = vld [vmem:[%s908_s1 + $0x10] sm:$0xff] (!%p190_p9)  ;;  %v704_v3 = vmov (!%p190_p9), 0.0|0.0   ;;  %vm705_vm0 = vmmov (!%p190_p9), 0   ;;  %v706_v6 = vmov (!%p190_p9), 0.0  }
   0xe   : > { %193 = sbr.rel (%p190_p9) target bundleno = 501 (0x1f5), region = 40  ;;  %566 = vmatprep.subr.bf16.mxu0 (!%p190_p9), %v704_v3  ;;  %v567_v4 = vpack.c.bf16 (!%p190_p9), %v222_v1, %v221_v0  ;;  %v224_v5 = vld [vmem:[%s908_s1 + $0x18] sm:$0xff] (!%p190_p9)  ;;  %528 = vmatprep.mubr.msk.f32.mxu0 (!%p190_p9), %vm705_vm0, %v706_v6  ;;  %p216_p10 = scmp.lt.s32.totalorder (!%p190_p9), %s759_s22, 1  ;;  %v226_v7 = vld [vmem:[%s910_s3] sm:$0xff] (!%p190_p9)  ;;  %v227_v8 = vld [vmem:[%s910_s3 + $0x8] sm:$0xff] (!%p190_p9)  ;;  %vm248_vm1 = vcmask (!%p190_p9), 261120  }
   0xf   : > { %572 = vmatprep.subr.bf16.mxu1 (!%p190_p9), %v704_v3  ;;  %v573_v9 = vpack.c.bf16 (!%p190_p9), %v227_v8, %v226_v7  ;;  %563 = vmatprep.mubr.msk.f32.mxu1 (!%p190_p9), %vm705_vm0, %v706_v6  ;;  %v570_v10 = vpack.c.bf16 (!%p190_p9), %v224_v5, %v223_v2  ;;  %v228_v12 = vld [vmem:[%s910_s3 + $0x10] sm:$0xff] (!%p190_p9)  ;;  %v229_v13 = vld [vmem:[%s910_s3 + $0x18] sm:$0xff] (!%p190_p9)  ;;  %v230_v15 = vld [vmem:[%s910_s3 + $0x20] sm:$0xff] (!%p190_p9)  ;;  %s213_s26 = sand.u32 (!%p190_p9), 1, %s694_s19   ;;  %s495_s8 = sshll.u32 (!%p190_p9), %s759_s22, 7 }
  0x10   : > { %568 = vmatpush3.bf16.msra.mxu0 (!%p190_p9), %v567_v4  ;;  %v576_v14 = vpack.c.bf16 (!%p190_p9), %v229_v13, %v228_v12  ;;  %v231_v16 = vld [vmem:[%s910_s3 + $0x28] sm:$0xff] (!%p190_p9)  ;;  %v232_v18 = vld [vmem:[%s910_s3 + $0x30] sm:$0xff] (!%p190_p9)  ;;  %v233_v19 = vld [vmem:[%s910_s3 + $0x38] sm:$0xff] (!%p190_p9)  ;;  %s864_s13 = scalar_lea.hbm (!%p190_p9), %s912_s5, %s495_s8  ;;  %s413_s14 = scalar_lea.sflag (!%p190_p9), [#allocation4], %s213_s26 }
  0x11   : > { %569 = vmatprep.subr.bf16.mxu0 (!%p190_p9), %v704_v3  ;;  %574 = vmatpush3.bf16.msra.mxu1 (!%p190_p9), %v573_v9  ;;  %v579_v17 = vpack.c.bf16 (!%p190_p9), %v231_v16, %v230_v15  ;;  %v582_v20 = vpack.c.bf16 (!%p190_p9), %v233_v19, %v232_v18  ;;  %v234_v21 = vld [vmem:[%s910_s3 + $0x40] sm:$0xff] (!%p190_p9)  ;;  %v235_v22 = vld [vmem:[%s910_s3 + $0x48] sm:$0xff] (!%p190_p9)  ;;  %v236_v24 = vld [vmem:[%s910_s3 + $0x50] sm:$0xff] (!%p190_p9) }
  0x12   : > { %575 = vmatprep.subr.bf16.mxu1 (!%p190_p9), %v704_v3  ;;  %v585_v23 = vpack.c.bf16 (!%p190_p9), %v235_v22, %v234_v21  ;;  %v237_v25 = vld [vmem:[%s910_s3 + $0x58] sm:$0xff] (!%p190_p9)  ;;  %v238_v27 = vld [vmem:[%s910_s3 + $0x60] sm:$0xff] (!%p190_p9)  ;;  %v239_v28 = vld [vmem:[%s910_s3 + $0x68] sm:$0xff] (!%p190_p9) }
  0x13   : > { %v588_v26 = vpack.c.bf16 (!%p190_p9), %v237_v25, %v236_v24  ;;  %v591_v29 = vpack.c.bf16 (!%p190_p9), %v239_v28, %v238_v27  ;;  %v240_v30 = vld [vmem:[%s910_s3 + $0x70] sm:$0xff] (!%p190_p9)  ;;  %v241_v31 = vld [vmem:[%s910_s3 + $0x78] sm:$0xff] (!%p190_p9)  ;;  %v491_v33 = vld [vmem:[%s909_s2] ss:$0 sm:$0xff] (!%p190_p9) }
  0x14   : > { %571 = vmatpush3.bf16.msra.mxu0 (!%p190_p9), %v570_v10  ;;  %v594_v32 = vpack.c.bf16 (!%p190_p9), %v241_v31, %v240_v30  ;;  %v493_v48 = vld [vmem:[%s911_s4] ss:$0 sm:$0xff] (!%p190_p9) }
  0x15   : > { %s217_s17 = scalar_select %p216_p10, %s759_s22, 1  ;;  %577 = vmatpush3.bf16.msra.mxu1 %v576_v14 }
  0x16   : > { %578 = vmatprep.subr.bf16.mxu1 %v704_v3  ;;  %s707_s22 = smov [#allocation3]  }
  0x17   : > { %s490_s23 = sshll.u32 %s217_s17, 3  ;;  %s644_s16 = sshll.u32 %s707_s22, 4  ;;  %s645_s16 = int_to_ptr.vmem [resolvable:$false] %s644_s16 }
  0x18   : > { %s219_s30 = scalar_lea.vmem %s907_s0, %s490_s23  ;;  %s646_s17 = scalar_lea.vmem %s645_s16, 256 }
  0x19   : > { %v220_v11 = vld [vmem:[%s219_s30] sm:$0xff]  ;;  %580 = vmatpush3.bf16.msra.mxu1 %v579_v17  ;;  %s489_s30 = sshll.u32 %s213_s26, 3 }
  0x1a   : > { %529 = vmatmul.mubr.msk.f32.vlgmr.msra.gmra.mrb[0].mxu0 %vm248_vm1, %v220_v11  ;;  %581 = vmatprep.subr.bf16.mxu1 %v704_v3  ;;  %s215_s9 = scalar_lea.vmem [#allocation3], %s489_s30 }
  0x1b   : > { %s426_s10 = sshll.u32 %s215_s9, 4  ;;  %s866_s10 = int_to_ptr.vmem [resolvable:$true] %s426_s10 }
  0x1c   : > { %s640_s15 = scalar_lea.vmem %s866_s10, 128  ;;  %p647_p0 = scmp.lt.s32.totalorder %s866_s10, %s645_s16 }
  0x1d   : > { %583 = vmatpush3.bf16.msra.mxu1 %v582_v20  ;;  %p641_p11 = scmp.ne.s32.totalorder %s866_s10, %s640_s15  ;;  %p648_p1 = scmp.lt.s32.totalorder %s646_s17, %s640_s15 }
  0x1e   : > { %584 = vmatprep.subr.bf16.mxu1 %v704_v3 }
  0x1f   : > { %p642_p12 = pnand %p641_p11, %p776_p5  ;;  %p649_p2 = por %p648_p1, %p647_p0 }
  0x21   : > { %586 = vmatpush3.bf16.msra.mxu1 %v585_v23  ;;  %p643_p13 = pneg %p642_p12 }
  0x22   : > { %587 = vmatprep.subr.bf16.mxu1 %v704_v3 }
  0x23   : > { %p650_p3 = pnand %p649_p2, %p643_p13 }
  0x25   : > { %589 = vmatpush3.bf16.msra.mxu1 %v588_v26 }
  0x26   : > { %590 = vmatprep.subr.bf16.mxu1 %v704_v3 }
  0x29   : > { %592 = vmatpush3.bf16.msra.mxu1 %v591_v29 }
  0x2a   : > { %593 = vmatprep.subr.bf16.mxu1 %v704_v3 }
  0x2d   : > { %595 = vmatpush3.bf16.msra.mxu1 %v594_v32 }
  0xed   : > { %v318_v34 = vpop.f32.mrb[0].mxu0 }
  0xee   : > { %v319_v35 = vadd.f32 %v491_v33, %v318_v34  ;;  %v530_v36 = vpop.f32.mrb[1].mxu0 }
  0xf0   : > { %v322_v37 = vmul.f32 %v319_v35, %v319_v35  ;;  %v328_v43 = vmul.f32 0.5, %v319_v35 }
  0xf2   : > { %v323_v38 = vmul.f32 %v322_v37, %v319_v35 }
  0xf4   : > { %v324_v39 = vmul.f32 0.044715, %v323_v38 }
  0xf6   : > { %v325_v40 = vadd.f32 %v324_v39, %v319_v35 }
  0xf8   : > { %v326_v41 = vmul.f32 0.7978846, %v325_v40 }
  0xfa   : > { %638 = vtanh.f32 %v326_v41 }
 0x104   : > { %v639_v42 = vpop.eup %638 }
 0x105   : > { %v329_v44 = vadd.f32 1.0, %v639_v42 }
 0x107   : > { %v330_v45 = vmul.f32 %v329_v44, %v328_v43 }
 0x109   : > { %564 = vmatmul.mubr.f32.vlgmr.msra.gmra.mrb[0].mxu1 %v330_v45 }
 0x1dc   : > { %v397_v46 = vpop.f32.mrb[0].mxu1 }
 0x1dd   : > { %401 = vst.msk [vmem:[#allocation2] sm:$0xff] %vm248_vm1, %v397_v46  ;;  %v565_v47 = vpop.f32.mrb[1].mxu1 }
 0x1e4   : > { %v402_v49 = vld [vmem:[#allocation2] sm:$0xff] }
 0x1e5   : > { %v410_v50 = vadd.f32 %v493_v48, %v402_v49 }
 0x1e7   : > { %411 = vst.msk [vmem:[%s215_s9] sm:$0xff] %vm248_vm1, %v410_v50 }
 0x1e8   : > { %653 = shalt.err (!%p650_p3)
}
 0x1e9   : > { %s654_s23 = scalar_lea.hbm %s864_s13, 128  ;;  %s658_s30 = scalar_lea.hbm %s912_s5, 256 }
 0x1ea   : > { %p655_p4 = scmp.ne.s32.totalorder %s864_s13, %s654_s23  ;;  %p659_p9 = scmp.lt.u32.totalorder %s864_s13, %s912_s5 }
 0x1eb   : > { %p660_p10 = scmp.lt.u32.totalorder %s658_s30, %s654_s23  ;;  %p662_p12 = scmp.lt.u32.totalorder %s654_s23, %s864_s13 }
 0x1ec   : > { %p656_p7 = pnand %p655_p4, %p776_p5 }
 0x1ed   : > { %p661_p11 = por %p660_p10, %p659_p9 }
 0x1ee   : > { %p657_p8 = pneg %p656_p7 }
 0x1ef   : > { %p663_p13 = por %p662_p12, %p661_p11 }
 0x1f1   : > { %p664_p0 = pnand %p663_p13, %p657_p8 }
 0x1f3   : > { %667 = shalt.err (!%p664_p0)
}
 0x1f4   : > { %596 = dma.vmem_to_hbm [thread:$0]  (%p776_p5), %s866_s10, 128, %s864_s13, %s413_s14  }
 0x1f5 PF: > { %p602_p1 = scmp.ge.s32.totalorder %s702_s21, 2  ;;  %s438_s8 = sand.u32 1, %s690_s18  }
 0x1f6   : > { %s439_s9 = scalar_lea.sflag [#allocation4], %s438_s8 }
 0x1f7   : > { %p599_p2 = pnand %p602_p1, %p780_p6 }
 0x1f9   : > { %685 = dma.done.wait (!%p599_p2), %s439_s9, 128  }
 0x1fa   : > { %687 = vsyncadd (!%p599_p2), %s439_s9, 4294967168  ;;  %p15_p3 = scmp.ge.s32.totalorder %s763_s24, 4   ;;  %s915_s18 = smov %s694_s19 }
 0x1fb   : > { %s916_s19 = smov %s698_s20  ;;  %s917_s20 = smov %s774_s27 }
 0x1fc   : > { %s918_s21 = smov %s763_s24  ;;  %17 = sbr.rel (!%p15_p3) target bundleno = 3 (0x3), region = 75 }
 0x203   :  { %444 = vsyncpa [#allocation4], 1 }
 0x204   :  { %446 = vsyncpa [#allocation4 + $0x1], 1 }

// kernel: tpu_custom_call.1
= control target key start
LH: loop header
LB: loop body
LE: loop exit
PB: predicated region body
PF: predicated region fallthrough
CT: control target
= control target key end

     0   :  { %10 = vsyncpa [#allocation4], 0  ;;  %s907_s0 = inlined_call_operand.vmem [shape: f32[16,32], index: 0, kind: input, shape index: {}]   ;;  %s908_s1 = inlined_call_operand.vmem [shape: f32[32,128], index: 1, kind: input, shape index: {}]   ;;  %s909_s2 = inlined_call_operand.vmem [shape: f32[1,128], index: 2, kind: input, shape index: {}]   ;;  %s910_s3 = inlined_call_operand.vmem [shape: f32[128,32], index: 3, kind: input, shape index: {}]   ;;  %s911_s4 = inlined_call_operand.vmem [shape: f32[1,32], index: 4, kind: input, shape index: {}]   ;;  %s912_s5 = inlined_call_operand.hbm [shape: f32[16,32], index: 5, kind: output, shape index: {}]  }
   0x1   :  { %12 = vsyncpa [#allocation4 + $0x1], 0  ;;  %s738_s18 = smov 0   ;;  %s740_s19 = smov 0  }
   0x2   :  { %s742_s20 = smov 0   ;;  %s744_s21 = smov 0  }
   0x3 LB: > { %s759_s22 = sadd.s32 4294967295, %s702_s21   ;;  %s485_s23 = sadd.s32 4294967294, %s702_s21   ;;  %s702_s21 = sphi %s744_s21, %s918_s21   ;;  %s698_s20 = sphi %s742_s20, %s917_s20   ;;  %s694_s19 = sphi %s740_s19, %s916_s19   ;;  %s690_s18 = sphi %s738_s18, %s915_s18  }
   0x4   : > { %s763_s24 = sadd.s32 1, %s702_s21   ;;  %s135_s25 = sadd.s32 1, %s698_s20 }
   0x5   : > { %s132_s26 = ssub.s32 %s702_s21, %s763_s24  ;;  %p145_p0 = scmp.ne.s32.totalorder %s698_s20, %s694_s19 }
   0x6   : > { %p133_p1 = scmp.eq.s32.totalorder %s132_s26, 0  ;;  %p146_p2 = scmp.eq.s32.totalorder %s759_s22, 1 }
   0x7   : > { %p151_p3 = scmp.ne.s32.totalorder %s694_s19, %s690_s18  ;;  %p152_p4 = scmp.eq.s32.totalorder %s485_s23, 1 }
   0x8   : > { %s774_s27 = scalar_select %p133_p1, %s698_s20, %s135_s25  }
   0x9   : > { %p776_p5 = por %p146_p2, %p145_p0  ;;  %p780_p6 = por %p152_p4, %p151_p3 }
   0xa   : > { %p488_p7 = scmp.ge.s32.totalorder %s702_s21, 1  ;;  %p189_p8 = scmp.lt.s32.totalorder %s702_s21, 3 }
   0xc   : > { %p190_p9 = pnand %p488_p7, %p189_p8 }
   0xd   : > { %v221_v0 = vld [vmem:[%s908_s1] sm:$0xff] (!%p190_p9)  ;;  %v222_v1 = vld [vmem:[%s908_s1 + $0x8] sm:$0xff] (!%p190_p9)  ;;  %v223_v2 = vld [vmem:[%s908_s1 + $0x10] sm:$0xff] (!%p190_p9)  ;;  %v704_v3 = vmov (!%p190_p9), 0.0|0.0   ;;  %vm705_vm0 = vmmov (!%p190_p9), 0   ;;  %v706_v6 = vmov (!%p190_p9), 0.0  }
   0xe   : > { %193 = sbr.rel (%p190_p9) target bundleno = 501 (0x1f5), region = 40  ;;  %566 = vmatprep.subr.bf16.mxu0 (!%p190_p9), %v704_v3  ;;  %v567_v4 = vpack.c.bf16 (!%p190_p9), %v222_v1, %v221_v0  ;;  %v224_v5 = vld [vmem:[%s908_s1 + $0x18] sm:$0xff] (!%p190_p9)  ;;  %528 = vmatprep.mubr.msk.f32.mxu0 (!%p190_p9), %vm705_vm0, %v706_v6  ;;  %p216_p10 = scmp.lt.s32.totalorder (!%p190_p9), %s759_s22, 1  ;;  %v226_v7 = vld [vmem:[%s910_s3] sm:$0xff] (!%p190_p9)  ;;  %v227_v8 = vld [vmem:[%s910_s3 + $0x8] sm:$0xff] (!%p190_p9)  ;;  %vm248_vm1 = vcmask (!%p190_p9), 261120  }
   0xf   : > { %572 = vmatprep.subr.bf16.mxu1 (!%p190_p9), %v704_v3  ;;  %v573_v9 = vpack.c.bf16 (!%p190_p9), %v227_v8, %v226_v7  ;;  %563 = vmatprep.mubr.msk.f32.mxu1 (!%p190_p9), %vm705_vm0, %v706_v6  ;;  %v570_v10 = vpack.c.bf16 (!%p190_p9), %v224_v5, %v223_v2  ;;  %v228_v12 = vld [vmem:[%s910_s3 + $0x10] sm:$0xff] (!%p190_p9)  ;;  %v229_v13 = vld [vmem:[%s910_s3 + $0x18] sm:$0xff] (!%p190_p9)  ;;  %v230_v15 = vld [vmem:[%s910_s3 + $0x20] sm:$0xff] (!%p190_p9)  ;;  %s213_s26 = sand.u32 (!%p190_p9), 1, %s694_s19   ;;  %s495_s8 = sshll.u32 (!%p190_p9), %s759_s22, 7 }
  0x10   : > { %568 = vmatpush3.bf16.msra.mxu0 (!%p190_p9), %v567_v4  ;;  %v576_v14 = vpack.c.bf16 (!%p190_p9), %v229_v13, %v228_v12  ;;  %v231_v16 = vld [vmem:[%s910_s3 + $0x28] sm:$0xff] (!%p190_p9)  ;;  %v232_v18 = vld [vmem:[%s910_s3 + $0x30] sm:$0xff] (!%p190_p9)  ;;  %v233_v19 = vld [vmem:[%s910_s3 + $0x38] sm:$0xff] (!%p190_p9)  ;;  %s864_s13 = scalar_lea.hbm (!%p190_p9), %s912_s5, %s495_s8  ;;  %s413_s14 = scalar_lea.sflag (!%p190_p9), [#allocation4], %s213_s26 }
  0x11   : > { %569 = vmatprep.subr.bf16.mxu0 (!%p190_p9), %v704_v3  ;;  %574 = vmatpush3.bf16.msra.mxu1 (!%p190_p9), %v573_v9  ;;  %v579_v17 = vpack.c.bf16 (!%p190_p9), %v231_v16, %v230_v15  ;;  %v582_v20 = vpack.c.bf16 (!%p190_p9), %v233_v19, %v232_v18  ;;  %v234_v21 = vld [vmem:[%s910_s3 + $0x40] sm:$0xff] (!%p190_p9)  ;;  %v235_v22 = vld [vmem:[%s910_s3 + $0x48] sm:$0xff] (!%p190_p9)  ;;  %v236_v24 = vld [vmem:[%s910_s3 + $0x50] sm:$0xff] (!%p190_p9) }
  0x12   : > { %575 = vmatprep.subr.bf16.mxu1 (!%p190_p9), %v704_v3  ;;  %v585_v23 = vpack.c.bf16 (!%p190_p9), %v235_v22, %v234_v21  ;;  %v237_v25 = vld [vmem:[%s910_s3 + $0x58] sm:$0xff] (!%p190_p9)  ;;  %v238_v27 = vld [vmem:[%s910_s3 + $0x60] sm:$0xff] (!%p190_p9)  ;;  %v239_v28 = vld [vmem:[%s910_s3 + $0x68] sm:$0xff] (!%p190_p9) }
  0x13   : > { %v588_v26 = vpack.c.bf16 (!%p190_p9), %v237_v25, %v236_v24  ;;  %v591_v29 = vpack.c.bf16 (!%p190_p9), %v239_v28, %v238_v27  ;;  %v240_v30 = vld [vmem:[%s910_s3 + $0x70] sm:$0xff] (!%p190_p9)  ;;  %v241_v31 = vld [vmem:[%s910_s3 + $0x78] sm:$0xff] (!%p190_p9)  ;;  %v491_v33 = vld [vmem:[%s909_s2] ss:$0 sm:$0xff] (!%p190_p9) }
  0x14   : > { %571 = vmatpush3.bf16.msra.mxu0 (!%p190_p9), %v570_v10  ;;  %v594_v32 = vpack.c.bf16 (!%p190_p9), %v241_v31, %v240_v30  ;;  %v493_v48 = vld [vmem:[%s911_s4] ss:$0 sm:$0xff] (!%p190_p9) }
  0x15   : > { %s217_s17 = scalar_select %p216_p10, %s759_s22, 1  ;;  %577 = vmatpush3.bf16.msra.mxu1 %v576_v14 }
  0x16   : > { %578 = vmatprep.subr.bf16.mxu1 %v704_v3  ;;  %s707_s22 = smov [#allocation3]  }
  0x17   : > { %s490_s23 = sshll.u32 %s217_s17, 3  ;;  %s644_s16 = sshll.u32 %s707_s22, 4  ;;  %s645_s16 = int_to_ptr.vmem [resolvable:$false] %s644_s16 }
  0x18   : > { %s219_s30 = scalar_lea.vmem %s907_s0, %s490_s23  ;;  %s646_s17 = scalar_lea.vmem %s645_s16, 256 }
  0x19   : > { %v220_v11 = vld [vmem:[%s219_s30] sm:$0xff]  ;;  %580 = vmatpush3.bf16.msra.mxu1 %v579_v17  ;;  %s489_s30 = sshll.u32 %s213_s26, 3 }
  0x1a   : > { %529 = vmatmul.mubr.msk.f32.vlgmr.msra.gmra.mrb[0].mxu0 %vm248_vm1, %v220_v11  ;;  %581 = vmatprep.subr.bf16.mxu1 %v704_v3  ;;  %s215_s9 = scalar_lea.vmem [#allocation3], %s489_s30 }
  0x1b   : > { %s426_s10 = sshll.u32 %s215_s9, 4  ;;  %s866_s10 = int_to_ptr.vmem [resolvable:$true] %s426_s10 }
  0x1c   : > { %s640_s15 = scalar_lea.vmem %s866_s10, 128  ;;  %p647_p0 = scmp.lt.s32.totalorder %s866_s10, %s645_s16 }
  0x1d   : > { %583 = vmatpush3.bf16.msra.mxu1 %v582_v20  ;;  %p641_p11 = scmp.ne.s32.totalorder %s866_s10, %s640_s15  ;;  %p648_p1 = scmp.lt.s32.totalorder %s646_s17, %s640_s15 }
  0x1e   : > { %584 = vmatprep.subr.bf16.mxu1 %v704_v3 }
  0x1f   : > { %p642_p12 = pnand %p641_p11, %p776_p5  ;;  %p649_p2 = por %p648_p1, %p647_p0 }
  0x21   : > { %586 = vmatpush3.bf16.msra.mxu1 %v585_v23  ;;  %p643_p13 = pneg %p642_p12 }
  0x22   : > { %587 = vmatprep.subr.bf16.mxu1 %v704_v3 }
  0x23   : > { %p650_p3 = pnand %p649_p2, %p643_p13 }
  0x25   : > { %589 = vmatpush3.bf16.msra.mxu1 %v588_v26 }
  0x26   : > { %590 = vmatprep.subr.bf16.mxu1 %v704_v3 }
  0x29   : > { %592 = vmatpush3.bf16.msra.mxu1 %v591_v29 }
  0x2a   : > { %593 = vmatprep.subr.bf16.mxu1 %v704_v3 }
  0x2d   : > { %595 = vmatpush3.bf16.msra.mxu1 %v594_v32 }
  0xed   : > { %v318_v34 = vpop.f32.mrb[0].mxu0 }
  0xee   : > { %v319_v35 = vadd.f32 %v491_v33, %v318_v34  ;;  %v530_v36 = vpop.f32.mrb[1].mxu0 }
  0xf0   : > { %v322_v37 = vmul.f32 %v319_v35, %v319_v35  ;;  %v328_v43 = vmul.f32 0.5, %v319_v35 }
  0xf2   : > { %v323_v38 = vmul.f32 %v322_v37, %v319_v35 }
  0xf4   : > { %v324_v39 = vmul.f32 0.044715, %v323_v38 }
  0xf6   : > { %v325_v40 = vadd.f32 %v324_v39, %v319_v35 }
  0xf8   : > { %v326_v41 = vmul.f32 0.7978846, %v325_v40 }
  0xfa   : > { %638 = vtanh.f32 %v326_v41 }
 0x104   : > { %v639_v42 = vpop.eup %638 }
 0x105   : > { %v329_v44 = vadd.f32 1.0, %v639_v42 }
 0x107   : > { %v330_v45 = vmul.f32 %v329_v44, %v328_v43 }
 0x109   : > { %564 = vmatmul.mubr.f32.vlgmr.msra.gmra.mrb[0].mxu1 %v330_v45 }
 0x1dc   : > { %v397_v46 = vpop.f32.mrb[0].mxu1 }
 0x1dd   : > { %401 = vst.msk [vmem:[#allocation2] sm:$0xff] %vm248_vm1, %v397_v46  ;;  %v565_v47 = vpop.f32.mrb[1].mxu1 }
 0x1e4   : > { %v402_v49 = vld [vmem:[#allocation2] sm:$0xff] }
 0x1e5   : > { %v410_v50 = vadd.f32 %v493_v48, %v402_v49 }
 0x1e7   : > { %411 = vst.msk [vmem:[%s215_s9] sm:$0xff] %vm248_vm1, %v410_v50 }
 0x1e8   : > { %653 = shalt.err (!%p650_p3)
}
 0x1e9   : > { %s654_s23 = scalar_lea.hbm %s864_s13, 128  ;;  %s658_s30 = scalar_lea.hbm %s912_s5, 256 }
 0x1ea   : > { %p655_p4 = scmp.ne.s32.totalorder %s864_s13, %s654_s23  ;;  %p659_p9 = scmp.lt.u32.totalorder %s864_s13, %s912_s5 }
 0x1eb   : > { %p660_p10 = scmp.lt.u32.totalorder %s658_s30, %s654_s23  ;;  %p662_p12 = scmp.lt.u32.totalorder %s654_s23, %s864_s13 }
 0x1ec   : > { %p656_p7 = pnand %p655_p4, %p776_p5 }
 0x1ed   : > { %p661_p11 = por %p660_p10, %p659_p9 }
 0x1ee   : > { %p657_p8 = pneg %p656_p7 }
 0x1ef   : > { %p663_p13 = por %p662_p12, %p661_p11 }
 0x1f1   : > { %p664_p0 = pnand %p663_p13, %p657_p8 }
 0x1f3   : > { %667 = shalt.err (!%p664_p0)
}
 0x1f4   : > { %596 = dma.vmem_to_hbm [thread:$0]  (%p776_p5), %s866_s10, 128, %s864_s13, %s413_s14  }
 0x1f5 PF: > { %p602_p1 = scmp.ge.s32.totalorder %s702_s21, 2  ;;  %s438_s8 = sand.u32 1, %s690_s18  }
 0x1f6   : > { %s439_s9 = scalar_lea.sflag [#allocation4], %s438_s8 }
 0x1f7   : > { %p599_p2 = pnand %p602_p1, %p780_p6 }
 0x1f9   : > { %685 = dma.done.wait (!%p599_p2), %s439_s9, 128  }
 0x1fa   : > { %687 = vsyncadd (!%p599_p2), %s439_s9, 4294967168  ;;  %p15_p3 = scmp.ge.s32.totalorder %s763_s24, 4   ;;  %s915_s18 = smov %s694_s19 }
 0x1fb   : > { %s916_s19 = smov %s698_s20  ;;  %s917_s20 = smov %s774_s27 }
 0x1fc   : > { %s918_s21 = smov %s763_s24  ;;  %17 = sbr.rel (!%p15_p3) target bundleno = 3 (0x3), region = 75 }
 0x203   :  { %444 = vsyncpa [#allocation4], 1 }
 0x204   :  { %446 = vsyncpa [#allocation4 + $0x1], 1 }

</bundles_post_ra>
